<compile_context>
chip_gen: v5e
topology: v5e:2x2
jax: 0.10.0
libtpu: 0.0.40
codegen_flags: <defaults>
</compile_context>

<pallas_src>
import math

import jax
import jax.numpy as jnp
from jax.experimental import pallas as pl
from jax.experimental.pallas import tpu as pltpu

_EPS = 1e-7


def _keep_probs(noise, lp_over_temp, inv_temp):
    """probs = sigmoid((logit_p + log((noise+eps)/(1-(noise-eps)))) / temp)."""
    r = (noise + _EPS) / (1.0 - (noise - _EPS))
    z = lp_over_temp + inv_temp * jnp.log(r)
    # numerically stable sigmoid via tanh (EUP op); |z| can reach ~160 with temp=0.1
    return 0.5 * (jnp.tanh(0.5 * z) + 1.0)


def _cdropout_kernel(par_ref, x_ref, noise_ref, u_ref, o_ref):
    """Concrete dropout with externally supplied noise and bernoulli uniforms u."""
    lp_over_temp = par_ref[0]         # SMEM scalar: logit_p / temp
    inv_temp = par_ref[1]             # SMEM scalar: 1 / temp
    noise = noise_ref[...].astype(jnp.float32)   # in-kernel cast (free under HBM roofline)
    u = u_ref[...].astype(jnp.float32)
    probs = _keep_probs(noise, lp_over_temp, inv_temp)
    keep = u < probs
    o_ref[...] = (x_ref[...] * keep.astype(o_ref.dtype)).astype(o_ref.dtype)


def _uniform_from_bits(shape):
    """U[0,1) from the hardware PRNG: 23 random mantissa bits -> [1,2) -> subtract 1."""
    bits = pltpu.prng_random_bits(shape)
    if bits.dtype != jnp.uint32:
        bits = pltpu.bitcast(bits, jnp.uint32)
    return pltpu.bitcast((bits >> 9) | jnp.uint32(0x3F800000), jnp.float32) - 1.0


def _cdropout_rng_kernel(seed_ref, par_ref, x_ref, o_ref):
    """Fully in-kernel-random concrete dropout (resample=True): reads only x, writes out."""
    # distinct, deterministic PRNG stream per grid tile
    pltpu.prng_seed(seed_ref[0] + pl.program_id(0))
    lp_over_temp = par_ref[0]
    inv_temp = par_ref[1]
    noise = _uniform_from_bits(x_ref.shape)      # torch.rand_like(x)
    u = _uniform_from_bits(x_ref.shape)          # uniforms behind torch.bernoulli(probs)
    probs = _keep_probs(noise, lp_over_temp, inv_temp)
    keep = u < probs
    o_ref[...] = (x_ref[...] * keep.astype(o_ref.dtype)).astype(o_ref.dtype)


def _pick_tile_rows(n_rows, bytes_per_row, sub, vmem_budget=12 << 20, cap=1024):
    """Largest row tile (multiple of `sub`) whose double-buffered working set fits the budget.

    `bytes_per_row` sums every pipelined stream (inputs AND output) at its real itemsize.
    No divisibility requirement: the caller uses pl.cdiv and a partial final block.
    """
    t = max(sub, vmem_budget // (2 * max(bytes_per_row, 1)))   # 2x: double-buffering
    t = min(t, cap)
    n_up = ((n_rows + sub - 1) // sub) * sub
    t = min(t, max(n_up, sub))
    t -= t % sub
    # prefer >= 4 grid steps (>= 2 per TensorCore on v7x) so each core still overlaps
    # input DMA / output writeback with compute
    quarter = (n_rows // 4) - ((n_rows // 4) % sub)
    if quarter >= sub:
        t = min(t, quarter)
    return max(t, sub)


def cdropout_forward(x, logit_p, temp, *, noise=None, u=None, seed=0, tile_rows=None,
                     vmem_budget=12 << 20):
    """CDropout training forward: x * bernoulli(sigmoid(concrete_p / temp)).

    x       : (..., in_dim) activations; leading dims are flattened into rows.
              NOTE: in_dim a multiple of 128 keeps the output stores lane-dense (fastest);
              other sizes are correct but use lane-masked partial stores.
    logit_p : scalar learnable keep-probability logit.
    temp    : scalar concrete-distribution temperature.
    noise,u : optional uniforms (same shape as x) backing the concrete noise and the
              bernoulli draw — pass both for exact parity with an external RNG.  If both
              are None they are generated in-kernel with the TPU hardware PRNG from `seed`
              (resample=True semantics; only x is read from HBM).
    """
    if (noise is None) != (u is None):
        raise ValueError("pass both `noise` and `u`, or neither (in-kernel PRNG path)")
    d = x.shape[-1]
    out_dtype = x.dtype
    x2 = x.reshape(-1, d)
    n = x2.shape[0]

    external = noise is not None
    if external:
        assert noise.shape == x.shape and u.shape == x.shape, "noise/u must match x's shape"
        noise2 = noise.reshape(-1, d)          # native dtype; cast to f32 inside the kernel
        u2 = u.reshape(-1, d)
        itemsizes = [x2.dtype.itemsize, noise2.dtype.itemsize, u2.dtype.itemsize,
                     jnp.dtype(out_dtype).itemsize]
    else:
        itemsizes = [x2.dtype.itemsize, jnp.dtype(out_dtype).itemsize]

    sub = 8 if min(itemsizes) >= 4 else 16
    if tile_rows is None:
        tile_rows = _pick_tile_rows(n, d * sum(itemsizes), sub, vmem_budget)

    # scalar params in SMEM: [logit_p / temp, 1 / temp]
    lp = jnp.asarray(logit_p, jnp.float32).reshape(())
    inv_temp = (jnp.float32(1.0) / jnp.asarray(temp, jnp.float32)).reshape(())
    params = jnp.stack([lp * inv_temp, inv_temp])

    grid = (pl.cdiv(n, tile_rows),)            # partial final block handled by Pallas
    row_spec = pl.BlockSpec((tile_rows, d), lambda i: (i, 0))
    smem_spec = pl.BlockSpec(memory_space=pltpu.MemorySpace.SMEM)
    cparams = pltpu.CompilerParams(dimension_semantics=("parallel",))
    out_shape = jax.ShapeDtypeStruct((n, d), out_dtype)

    if external:
        out2 = pl.pallas_call(
            _cdropout_kernel,
            out_shape=out_shape,
            grid=grid,
            in_specs=[smem_spec, row_spec, row_spec, row_spec],
            out_specs=row_spec,
            compiler_params=cparams,
        )(params, x2, noise2, u2)
    else:
        seed_arr = jnp.asarray([seed], jnp.int32)
        out2 = pl.pallas_call(
            _cdropout_rng_kernel,
            out_shape=out_shape,
            grid=grid,
            in_specs=[smem_spec, smem_spec, row_spec],
            out_specs=row_spec,
            compiler_params=cparams,
        )(seed_arr, params, x2)

    return out2.reshape(x.shape)


def cdropout_reference(x, noise, u, logit_p, temp):
    """Pure-JAX reference of CDropout.forward (training) given explicit uniforms u."""
    noise_p = noise + 1e-7
    noise_m = noise - 1e-7
    concrete_p = logit_p + jnp.log(noise_p / (1.0 - noise_m))
    probs = jax.nn.sigmoid(concrete_p / temp)
    mask = (u < probs).astype(x.dtype)   # forward value of (bernoulli - probs).detach() + probs
    return x * mask, probs


if __name__ == "__main__":
    # Small shapes consistent with the module: x is (batch, in_dim), mask_dims=2.
    N, in_dim = 256, 128
    rate = 0.3
    temperature = 0.1
    p_keep = 1.0 - rate
    logit_p0 = -math.log(1.0 / p_keep - 1.0)   # CDropout.__init__: logit_p = -log(1/p - 1)

    key = jax.random.PRNGKey(0)
    kx, knoise, ku = jax.random.split(key, 3)
    x = jax.random.normal(kx, (N, in_dim), dtype=jnp.float32)
    noise = jax.random.uniform(knoise, (N, in_dim), dtype=jnp.float32)  # self.noise buffer
    u = jax.random.uniform(ku, (N, in_dim), dtype=jnp.float32)          # uniforms behind bernoulli

    logit_p = jnp.float32(logit_p0)
    temp = jnp.float32(temperature)

    # ---- path 1: externally supplied uniforms (parity vs reference) ----
    out = jax.block_until_ready(cdropout_forward(x, logit_p, temp, noise=noise, u=u))
    out_ref, probs_ref = cdropout_reference(x, noise, u, logit_p, temp)
    assert out.shape == x.shape and out.dtype == x.dtype
    # elements within float-eps of the bernoulli threshold may legitimately flip
    # (tanh-form sigmoid in-kernel vs lax.logistic in the reference); exclude them.
    near = jnp.abs(u - probs_ref) < 1e-4
    assert bool(jnp.all(near | (out == out_ref))), "mismatch vs reference"

    # ---- ragged row count: exercises the pad-free partial final block ----
    n2 = 203
    out_r = jax.block_until_ready(
        cdropout_forward(x[:n2], logit_p, temp, noise=noise[:n2], u=u[:n2]))
    out_ref_r, probs_ref_r = cdropout_reference(x[:n2], noise[:n2], u[:n2], logit_p, temp)
    near_r = jnp.abs(u[:n2] - probs_ref_r) < 1e-4
    assert bool(jnp.all(near_r | (out_r == out_ref_r))), "mismatch vs reference (ragged rows)"

    # ---- path 2: fully in-kernel random (hardware PRNG; TPU backend only) ----
    # pltpu.prng_seed / prng_random_bits have no CPU/interpret lowering, so this path is
    # only exercised on a real TPU backend.
    if jax.default_backend() == "tpu":
        out2 = jax.block_until_ready(cdropout_forward(x, logit_p, temp, seed=1234))
        assert out2.shape == x.shape and out2.dtype == x.dtype
        assert bool(jnp.all((out2 == 0) | (out2 == x))), "PRNG path produced non-mask output"
        keep_rate = float(jnp.mean((out2 != 0).astype(jnp.float32)))
        assert abs(keep_rate - p_keep) < 0.03, "PRNG keep-rate off"

    print("KERNEL_OK")
</pallas_src>

<mosaic_0001>
module attributes {stable_mosaic.version = 11 : i64} {
  func.func @_cdropout_kernel(%arg0: i32, %arg1: memref<2xf32, #tpu.memory_space<smem>>, %arg2: memref<64x128xf32, #tpu.memory_space<vmem>>, %arg3: memref<64x128xf32, #tpu.memory_space<vmem>>, %arg4: memref<64x128xf32, #tpu.memory_space<vmem>>, %arg5: memref<64x128xf32, #tpu.memory_space<vmem>>) attributes {dimension_semantics = [#tpu.dimension_semantics<parallel>], iteration_bounds = array<i64: 4>, scalar_prefetch = 0 : i64, scratch_operands = 0 : i64, tpu.core_type = #tpu.core_type<tc>, window_params = [{transform_indices = @transform_0, window_bounds = array<i64: 2>}, {transform_indices = @transform_1, window_bounds = array<i64: 64, 128>}, {transform_indices = @transform_2, window_bounds = array<i64: 64, 128>}, {transform_indices = @transform_3, window_bounds = array<i64: 64, 128>}, {transform_indices = @transform_4, window_bounds = array<i64: 64, 128>}]} {
    %c0 = arith.constant 0 : index
    %0 = memref.load %arg1[%c0] : memref<2xf32, #tpu.memory_space<smem>>
    %c1 = arith.constant 1 : index
    %1 = memref.load %arg1[%c1] : memref<2xf32, #tpu.memory_space<smem>>
    %c0_0 = arith.constant 0 : index
    %c0_1 = arith.constant 0 : index
    %2 = vector.load %arg3[%c0_0, %c0_1] : memref<64x128xf32, #tpu.memory_space<vmem>>, vector<64x128xf32>
    %c0_2 = arith.constant 0 : index
    %c0_3 = arith.constant 0 : index
    %3 = vector.load %arg4[%c0_2, %c0_3] : memref<64x128xf32, #tpu.memory_space<vmem>>, vector<64x128xf32>
    %cst = arith.constant 1.000000e-07 : f32
    %4 = vector.broadcast %cst : f32 to vector<64x128xf32>
    %5 = arith.addf %2, %4 : vector<64x128xf32>
    %cst_4 = arith.constant 1.000000e-07 : f32
    %6 = vector.broadcast %cst_4 : f32 to vector<64x128xf32>
    %7 = arith.subf %2, %6 : vector<64x128xf32>
    %cst_5 = arith.constant 1.000000e+00 : f32
    %8 = vector.broadcast %cst_5 : f32 to vector<64x128xf32>
    %9 = arith.subf %8, %7 : vector<64x128xf32>
    %10 = arith.divf %5, %9 : vector<64x128xf32>
    %11 = math.log %10 : vector<64x128xf32>
    %12 = vector.broadcast %1 : f32 to vector<64x128xf32>
    %13 = arith.mulf %12, %11 : vector<64x128xf32>
    %14 = vector.broadcast %0 : f32 to vector<64x128xf32>
    %15 = arith.addf %14, %13 : vector<64x128xf32>
    %cst_6 = arith.constant 5.000000e-01 : f32
    %16 = vector.broadcast %cst_6 : f32 to vector<64x128xf32>
    %17 = arith.mulf %16, %15 : vector<64x128xf32>
    %18 = math.tanh %17 : vector<64x128xf32>
    %cst_7 = arith.constant 1.000000e+00 : f32
    %19 = vector.broadcast %cst_7 : f32 to vector<64x128xf32>
    %20 = arith.addf %18, %19 : vector<64x128xf32>
    %cst_8 = arith.constant 5.000000e-01 : f32
    %21 = vector.broadcast %cst_8 : f32 to vector<64x128xf32>
    %22 = arith.mulf %21, %20 : vector<64x128xf32>
    %23 = arith.cmpf olt, %3, %22 : vector<64x128xf32>
    %c0_9 = arith.constant 0 : index
    %c0_10 = arith.constant 0 : index
    %24 = vector.load %arg2[%c0_9, %c0_10] : memref<64x128xf32, #tpu.memory_space<vmem>>, vector<64x128xf32>
    %25 = arith.extui %23 : vector<64x128xi1> to vector<64x128xi32>
    %26 = arith.sitofp %25 : vector<64x128xi32> to vector<64x128xf32>
    %27 = arith.mulf %24, %26 : vector<64x128xf32>
    %c0_11 = arith.constant 0 : index
    %c0_12 = arith.constant 0 : index
    %28 = vector.load %arg5[%c0_11, %c0_12] : memref<64x128xf32, #tpu.memory_space<vmem>>, vector<64x128xf32>
    tpu.vector_store %arg5[%c0_11, %c0_12], %27 {strides = array<i32>} : memref<64x128xf32, #tpu.memory_space<vmem>>, vector<64x128xf32>,
    return
  }
  func.func @transform_0(%arg0: i32) -> i32 {
    %c0_i32 = arith.constant 0 : i32
    %c0_i32_0 = arith.constant 0 : i32
    return %c0_i32 : i32
  }
  func.func @transform_1(%arg0: i32) -> (i32, i32) {
    %c0_i32 = arith.constant 0 : i32
    %c0_i32_0 = arith.constant 0 : i32
    return %arg0, %c0_i32 : i32, i32
  }
  func.func @transform_2(%arg0: i32) -> (i32, i32) {
    %c0_i32 = arith.constant 0 : i32
    %c0_i32_0 = arith.constant 0 : i32
    return %arg0, %c0_i32 : i32, i32
  }
  func.func @transform_3(%arg0: i32) -> (i32, i32) {
    %c0_i32 = arith.constant 0 : i32
    %c0_i32_0 = arith.constant 0 : i32
    return %arg0, %c0_i32 : i32, i32
  }
  func.func @transform_4(%arg0: i32) -> (i32, i32) {
    %c0_i32 = arith.constant 0 : i32
    %c0_i32_0 = arith.constant 0 : i32
    return %arg0, %c0_i32 : i32, i32
  }
}

</mosaic_0001>

<bundles_post_ra>
// kernel: tpu_custom_call.1
= control target key start
LH: loop header
LB: loop body
LE: loop exit
PB: predicated region body
PF: predicated region fallthrough
CT: control target
= control target key end

     0   :  { %s1574_s0 = inlined_call_operand.hbm [shape: f32[2], index: 0, kind: input, shape index: {}]   ;;  %s1575_s1 = inlined_call_operand.hbm [shape: f32[256,128], index: 1, kind: input, shape index: {}]   ;;  %s1576_s2 = inlined_call_operand.hbm [shape: f32[256,128], index: 2, kind: input, shape index: {}]   ;;  %s1577_s3 = inlined_call_operand.hbm [shape: f32[256,128], index: 3, kind: input, shape index: {}]   ;;  %s1578_s4 = inlined_call_operand.hbm [shape: f32[256,128], index: 4, kind: output, shape index: {}]  }
   0x1   :  { %1587 = sst [smem:[#allocation18_spill]] %s1574_s0 }
   0x2   :  { %1588 = sst [smem:[#allocation19_spill]] %s1576_s2 }
   0x3   :  { %9 = vsyncpa [#allocation5], 0 }
   0x4   :  { %10 = vsyncpa [#allocation3], 0 }
   0x5   :  { %12 = vsyncpa [#allocation3 + $0x1], 0 }
   0x6   :  { %13 = vsyncpa [#allocation8], 0 }
   0x7   :  { %15 = vsyncpa [#allocation8 + $0x1], 0 }
   0x8   :  { %16 = vsyncpa [#allocation4], 0 }
   0x9   :  { %18 = vsyncpa [#allocation4 + $0x1], 0  ;;  %s1114_s15 = smov 0   ;;  %s1116_s16 = smov 0  }
   0xa   :  { %s1118_s17 = smov 0   ;;  %s1120_s18 = smov 0  }
   0xb LB: > { %s1135_s19 = sadd.s32 1, %s1081_s18   ;;  %s52_s20 = sadd.s32 1, %s1077_s17  ;;  %s1081_s18 = sphi %s1120_s18, %s1635_s18   ;;  %s1077_s17 = sphi %s1118_s17, %s1639_s17   ;;  %s1073_s16 = sphi %s1116_s16, %s1638_s16   ;;  %s1069_s15 = sphi %s1114_s15, %s1637_s15  }
   0xc   : > { %1589 = sst [smem:[#allocation15_spill]] %s1135_s19  ;;  %s49_s21 = ssub.s32 %s1081_s18, %s1135_s19 }
   0xd   : > { %p59_p0 = scmp.ne.s32.totalorder %s1077_s17, %s1073_s16  ;;  %p50_p1 = scmp.eq.s32.totalorder %s49_s21, 0 }
   0xe   : > { %p60_p2 = scmp.eq.s32.totalorder %s1081_s18, 0  ;;  %p813_p3 = scmp.lt.s32.totalorder %s1081_s18, 4 }
   0xf   : > { %s1145_s22 = scalar_select %p50_p1, %s1077_s17, %s52_s20  }
  0x10   : > { %p61_p4 = por %p60_p2, %p59_p0  ;;  %s1583_s23 = sand.u32 1, %s1077_s17  }
  0x11   : > { %1590 = sst [smem:[#allocation16_spill]] %s1145_s22  ;;  %s1153_s24 = sshll.u32 %s1583_s23, 6 }
  0x12   : > { %s1156_s25 = sshll.u32 %s1081_s18, 6  ;;  %p1158_p5 = pnand %p813_p3, %p61_p4 }
  0x13   : > { %s199_s27 = sand.u32 1, %s1081_s18   ;;  %s1592_s2 = sld [smem:[#allocation19_spill]] }
  0x14   : > { %s203_s6 = scalar_lea.vmem [#allocation7], %s1153_s24  ;;  %s1168_s8 = scalar_lea.sflag [#allocation8], %s199_s27 }
  0x15   : > { %s211_s7 = sshll.u32 %s203_s6, 4  ;;  %p906_p7 = pneg %p1158_p5  ;;  %s212_s7 = int_to_ptr.vmem [resolvable:$true] %s211_s7 }
  0x19   : > { %s208_s30 = scalar_lea.hbm %s1592_s2, %s1156_s25  ;;  %s909_s13 = scalar_lea.hbm %s1592_s2, 256 }
  0x1a   : > { %s209_s5 = sshll.u32 %s208_s30, 4  ;;  %s210_s5 = int_to_ptr.hbm [resolvable:$true] %s209_s5 }
  0x1b   : > { %s902_s9 = sshra.s32 %s210_s5, 4  ;;  %s903_s9 = int_to_ptr.hbm [resolvable:$true] %s902_s9 }
  0x1c   : > { %s904_s10 = scalar_lea.hbm %s903_s9, 64  ;;  %p910_p10 = scmp.lt.s32.totalorder %s903_s9, %s1592_s2 }
  0x1d   : > { %p905_p6 = scmp.ne.s32.totalorder %s903_s9, %s904_s10  ;;  %p911_p11 = scmp.lt.s32.totalorder %s909_s13, %s904_s10 }
  0x1f   : > { %p907_p8 = pnand %p906_p7, %p905_p6  ;;  %p912_p12 = por %p911_p11, %p910_p10 }
  0x21   : > { %p908_p9 = pneg %p907_p8 }
  0x23   : > { %p913_p13 = pnand %p912_p12, %p908_p9 }
  0x25   : > { %916 = shalt.err (!%p913_p13)
}
  0x26   : > { %s1579_s21 = smov 128   ;;  %s1581_s27 = smov 8  }
  0x27   : > { %804 = dma.hbm_to_vmem [thread:$0]  (!%p1158_p5), %s210_s5, 1024, %s212_s7, %s1168_s8, %s1579_s21, %s1579_s21, %s1581_s27  }
  0x28   : > { %s1188_s28 = sadd.s32 4294967295, %s1081_s18   ;;  %s737_s29 = sadd.s32 4294967294, %s1081_s18  }
  0x29   : > { %p65_p1 = scmp.ne.s32.totalorder %s1073_s16, %s1069_s15  ;;  %p66_p2 = scmp.eq.s32.totalorder %s1188_s28, 0 }
  0x2a   : > { %p141_p3 = scmp.eq.s32.totalorder %s1188_s28, 3  ;;  %p147_p4 = scmp.eq.s32.totalorder %s737_s29, 3 }
  0x2b   : > { %p1197_p6 = por %p66_p2, %p65_p1  ;;  %p738_p8 = scmp.ge.s32.totalorder %s1081_s18, 1 }
  0x2c   : > { %p1205_p9 = por %p141_p3, %p59_p0  ;;  %p1209_p10 = por %p147_p4, %p65_p1 }
  0x2d   : > { %p154_p11 = scmp.lt.s32.totalorder %s1081_s18, 5  ;;  %s1597_s0 = sld [smem:[#allocation18_spill]] }
  0x2e   : > { %s1595_s6 = scalar_select %p1209_p10, 1, 0 }
  0x2f   : > { %p1217_p12 = pnand %p738_p8, %p154_p11  ;;  %s186_s14 = scalar_lea.hbm %s1575_s1, %s1156_s25 }
  0x30   : > { %1596 = sst [smem:[#allocation17_spill]] %s1595_s6  ;;  %s187_s20 = sshll.u32 %s186_s14, 4  ;;  %s188_s20 = int_to_ptr.hbm [resolvable:$true] %s187_s20 }
  0x31   : > { %p794_p0 = pneg %p1217_p12  ;;  %s181_s29 = scalar_lea.vmem [#allocation6], %s1153_s24 }
  0x32   : > { %s189_s21 = sshll.u32 %s181_s29, 4  ;;  %s230_s27 = scalar_lea.hbm %s1577_s3, %s1156_s25  ;;  %s190_s21 = int_to_ptr.vmem [resolvable:$true] %s189_s21 }
  0x33   : > { %s166_s10 = sshll.u32 %s1597_s0, 4  ;;  %p795_p13 = pnand %p794_p0, %p66_p2  ;;  %s167_s10 = int_to_ptr.hbm [resolvable:$true] %s166_s10 }
  0x34   : > { %s1085_s23 = smov [#allocation2]   ;;  %s1599_s0 = sand.u32 1, %s1077_s17  }
  0x35   : > { %797 = dma.hbm_to_smem (!%p795_p13), %s167_s10, 16, %s1085_s23, [#allocation5]  }
  0x36   : > { %s178_s2 = scalar_lea.sflag [#allocation3], %s1599_s0  ;;  %s947_s22 = sshra.s32 %s188_s20, 4  ;;  %s948_s22 = int_to_ptr.hbm [resolvable:$true] %s947_s22 }
  0x37   : > { %s949_s12 = scalar_lea.hbm %s948_s22, 64  ;;  %s954_s29 = scalar_lea.hbm %s1575_s1, 256 }
  0x38   : > { %p950_p1 = scmp.ne.s32.totalorder %s948_s22, %s949_s12  ;;  %p955_p8 = scmp.lt.s32.totalorder %s948_s22, %s1575_s1 }
  0x39   : > { %p956_p11 = scmp.lt.s32.totalorder %s954_s29, %s949_s12 }
  0x3a   : > { %p952_p3 = pnand %p950_p1, %p906_p7 }
  0x3b   : > { %p957_p0 = por %p956_p11, %p955_p8 }
  0x3c   : > { %p953_p4 = pneg %p952_p3 }
  0x3e   : > { %p958_p13 = pnand %p957_p0, %p953_p4 }
  0x40   : > { %961 = shalt.err (!%p958_p13)
}
  0x41   : > { %s1600_s0 = smov 8   ;;  %s1601_s23 = smov 128  }
  0x42   : > { %801 = dma.hbm_to_vmem [thread:$0]  (!%p1158_p5), %s188_s20, 1024, %s190_s21, %s178_s2, %s1601_s23, %s1601_s23, %s1600_s0  }
  0x43   : > { %s231_s25 = sshll.u32 %s230_s27, 4  ;;  %s225_s10 = scalar_lea.vmem [#allocation9], %s1153_s24  ;;  %s232_s25 = int_to_ptr.hbm [resolvable:$true] %s231_s25 }
  0x44   : > { %s233_s7 = sshll.u32 %s225_s10, 4  ;;  %s977_s9 = sshra.s32 %s232_s25, 4  ;;  %s234_s7 = int_to_ptr.vmem [resolvable:$true] %s233_s7  ;;  %s978_s9 = int_to_ptr.hbm [resolvable:$true] %s977_s9 }
  0x45   : > { %s979_s19 = scalar_lea.hbm %s978_s9, 64  ;;  %s984_s12 = scalar_lea.hbm %s1577_s3, 256 }
  0x46   : > { %p980_p1 = scmp.ne.s32.totalorder %s978_s9, %s979_s19  ;;  %p985_p8 = scmp.lt.s32.totalorder %s978_s9, %s1577_s3 }
  0x47   : > { %p986_p11 = scmp.lt.s32.totalorder %s984_s12, %s979_s19 }
  0x48   : > { %p982_p3 = pnand %p980_p1, %p906_p7 }
  0x49   : > { %p987_p0 = por %p986_p11, %p985_p8 }
  0x4a   : > { %p983_p4 = pneg %p982_p3 }
  0x4c   : > { %p988_p13 = pnand %p987_p0, %p983_p4 }
  0x4e   : > { %991 = shalt.err (!%p988_p13)
}
  0x4f   : > { %807 = dma.hbm_to_vmem [thread:$0]  (!%p1158_p5), %s232_s25, 1024, %s234_s7, %s1168_s8, %s1601_s23, %s1601_s23, %s1600_s0  }
  0x50   : > { %245 = sbr.rel (%p1217_p12) target bundleno = 177 (0xb1), region = 36 }
  0x55   : > { %1052 = dma.done.wait (%p66_p2), [#allocation5], 16  }
  0x56   : > { %1054 = vsyncadd (%p66_p2), [#allocation5], 4294967280  ;;  %s1273_s2 = sand.u32 1, %s1073_s16  }
  0x57   : > { %s1276_s24 = sshll.u32 %s1273_s2, 6  ;;  %s253_s26 = scalar_lea.sflag [#allocation3], %s1273_s2 }
  0x58   : > { %s1280_s8 = scalar_lea.vmem [#allocation6], %s1276_s24 }
  0x59   : > { %1056 = dma.done.wait (%p1197_p6), %s253_s26, 1024  }
  0x5a   : > { %1058 = vsyncadd (%p1197_p6), %s253_s26, 4294966272  ;;  %s262_s21 = sand.u32 1, %s1188_s28   ;;  %s1288_s11 = scalar_lea.vmem [#allocation7], %s1276_s24 }
  0x5b   : > { %s263_s27 = scalar_lea.sflag [#allocation8], %s262_s21 }
  0x5c   : > { %1060 = dma.done.wait (%p1197_p6), %s263_s27, 2048  }
  0x5d   : > { %1062 = vsyncadd (%p1197_p6), %s263_s27, 4294965248  ;;  %s1295_s20 = scalar_lea.vmem [#allocation9], %s1276_s24 }
  0x5e   : > { %282 = sfence }
  0x5f   : > { %v319_v0 = vld [vmem:[%s1288_s11] sm:$0xff]  ;;  %v320_v1 = vld [vmem:[%s1288_s11 + $0x8] sm:$0xff]  ;;  %s317_s29 = sld [smem:[#allocation2]]  ;;  %v321_v4 = vld [vmem:[%s1288_s11 + $0x10] sm:$0xff]  ;;  %s1511_s30 = scalar_lea.vmem [#allocation10], %s1276_s24 }
  0x60   : > { %v757_v2 = vadd.f32 -1e-07, %v319_v0  ;;  %v758_v3 = vadd.f32 -1e-07, %v320_v1  ;;  %s756_s0 = sld [smem:[#allocation2 + $0x1]]  ;;  %v322_v6 = vld [vmem:[%s1288_s11 + $0x18] sm:$0xff] }
  0x61   : > { %v759_v8 = vadd.f32 -1e-07, %v321_v4  ;;  %v760_v9 = vadd.f32 -1e-07, %v322_v6  ;;  %v1301_v10 = vadd.f32 1e-07, %v319_v0 }
  0x62   : > { %v351_v5 = vsub.f32 1.0, %v757_v2  ;;  %v352_v7 = vsub.f32 1.0, %v758_v3  ;;  %v1303_v13 = vadd.f32 1e-07, %v320_v1  ;;  %v323_v15 = vld [vmem:[%s1288_s11 + $0x20] sm:$0xff]  ;;  %v324_v34 = vld [vmem:[%s1288_s11 + $0x28] sm:$0xff] }
  0x63   : > { %v1306_v17 = vadd.f32 1e-07, %v321_v4  ;;  %v1308_v18 = vsub.f32 1.0, %v759_v8  ;;  %v1310_v19 = vsub.f32 1.0, %v760_v9  ;;  %v1314_v21 = vadd.f32 1e-07, %v322_v6 }
  0x64   : > { %854 = vrcp.f32 %v351_v5  ;;  %v368_v11 = vand.u32 2147483647, %v351_v5  ;;  %v370_v12 = vand.u32 2147483648, %v351_v5  ;;  %v383_v14 = vand.u32 2147483647, %v352_v7  ;;  %v325_v41 = vld [vmem:[%s1288_s11 + $0x30] sm:$0xff] }
  0x65   : > { %856 = vrcp.f32 %v352_v7  ;;  %v385_v16 = vand.u32 2147483648, %v352_v7  ;;  %vm364_vm0 = vweird.f32 %v351_v5  ;;  %v1312_v20 = vstv %s317_s29  ;;  %v1377_v4 = vld [vmem:[%s1288_s11 + $0x38] sm:$0xff]  ;;  %s781_s23 = sshll.u32 %s1188_s28, 6  ;;  %s606_s9 = sshll.u32 %s1511_s30, 4  ;;  %s607_s9 = int_to_ptr.vmem [resolvable:$true] %s606_s9 }
  0x66   : > { %vm379_vm1 = vweird.f32 %v352_v7  ;;  %vm1316_vm2 = vcmp.eq.f32.partialorder %v368_v11, 8.507059e+37  ;;  %v371_v23 = vor.u32 1.1754944e-38, %v370_v12  ;;  %858 = vrcp.f32 %v1308_v18  ;;  %s605_s7 = scalar_lea.hbm %s1578_s4, %s781_s23  ;;  %s594_s28 = scalar_lea.sflag [#allocation4], %s1273_s2 }
  0x67   : > { %v761_v24 = vadd.f32 -1e-07, %v323_v15  ;;  %v1321_v26 = vstv %s756_s0  ;;  %vm1323_vm3 = vcmp.eq.f32.partialorder %v383_v14, 8.507059e+37  ;;  %v398_v28 = vand.u32 2147483647, %v1308_v18  ;;  %s608_s19 = sshll.u32 %s605_s7, 4  ;;  %s609_s19 = int_to_ptr.hbm [resolvable:$true] %s608_s19 }
  0x68   : > { %860 = vrcp.f32 %v1310_v19  ;;  %v386_v31 = vor.u32 1.1754944e-38, %v385_v16  ;;  %v400_v32 = vand.u32 2147483648, %v1308_v18  ;;  %v1330_v33 = vadd.f32 1e-07, %v323_v15  ;;  %s1021_s22 = sshra.s32 %s609_s19, 4  ;;  %s1027_s14 = scalar_lea.hbm %s1578_s4, 256  ;;  %s1022_s22 = int_to_ptr.hbm [resolvable:$true] %s1021_s22 }
  0x69   : > { %vm394_vm4 = vweird.f32 %v1308_v18  ;;  %v413_v36 = vand.u32 2147483647, %v1310_v19  ;;  %v1335_v37 = vadd.f32 1e-07, %v324_v34  ;;  %v415_v39 = vand.u32 2147483648, %v1310_v19  ;;  %s1023_s6 = scalar_lea.hbm %s1022_s22, 64  ;;  %p1028_p6 = scmp.lt.s32.totalorder %s1022_s22, %s1578_s4 }
  0x6a   : > { %v855_v25 = vpop.eup %854  ;;  %v1338_v40 = vsub.f32 1.0, %v761_v24  ;;  %vm1341_vm7 = vcmp.eq.f32.partialorder %v398_v28, 8.507059e+37  ;;  %vm409_vm8 = vweird.f32 %v1310_v19  ;;  %v401_v46 = vor.u32 1.1754944e-38, %v400_v32  ;;  %p1024_p5 = scmp.ne.s32.totalorder %s1022_s22, %s1023_s6  ;;  %p1029_p12 = scmp.lt.s32.totalorder %s1027_s14, %s1023_s6 }
  0x6b   : > { %v857_v29 = vpop.eup %856  ;;  %v360_v30 = vmul.f32 %v855_v25, %v351_v5  ;;  %vm365_vm5 = vweird.f32 %v855_v25  ;;  %v762_v47 = vadd.f32 -1e-07, %v324_v34  ;;  %vm1353_vm10 = vcmp.eq.f32.partialorder %v413_v36, 8.507059e+37 }
  0x6c   : > { %v375_v35 = vmul.f32 %v857_v29, %v352_v7  ;;  %vm380_vm6 = vweird.f32 %v857_v29  ;;  %v859_v44 = vpop.eup %858  ;;  %862 = vrcp.f32 %v1338_v40  ;;  %vm1348_vm9 = vmor %vm364_vm0, %vm365_vm5  ;;  %v763_v53 = vadd.f32 -1e-07, %v325_v41  ;;  %p1025_p7 = pnand %p1024_p5, %p1205_p9  ;;  %p1030_p1 = por %p1029_p12, %p1028_p6 }
  0x6d   : > { %v361_v38 = vsub.f32 1.0, %v360_v30  ;;  %v390_v51 = vmul.f32 %v859_v44, %v1308_v18  ;;  %vm1359_vm11 = vmor %vm379_vm1, %vm380_vm6  ;;  %v416_v57 = vor.u32 1.1754944e-38, %v415_v39  ;;  %vm424_vm12 = vweird.f32 %v1338_v40 }
  0x6e   : > { %v376_v42 = vsub.f32 1.0, %v375_v35  ;;  %v861_v48 = vpop.eup %860  ;;  %vm395_vm13 = vweird.f32 %v859_v44  ;;  %v428_v60 = vand.u32 2147483647, %v1338_v40  ;;  %v1368_v63 = vsub.f32 1.0, %v762_v47  ;;  %p1026_p2 = pneg %p1025_p7 }
  0x6f   : > { %v362_v45 = vmul.f32 %v855_v25, %v361_v38  ;;  %v405_v56 = vmul.f32 %v861_v48, %v1310_v19  ;;  %v391_v59 = vsub.f32 1.0, %v390_v51  ;;  %vm410_vm14 = vweird.f32 %v861_v48  ;;  %vm1384_vm15 = vmor %vm394_vm4, %vm395_vm13 }
  0x70   : > { %v377_v50 = vmul.f32 %v857_v29, %v376_v42  ;;  %v1374_v3 = vsub.f32 1.0, %v763_v53  ;;  %864 = vrcp.f32 %v1368_v63  ;;  %vm1393_vm0 = vmor %vm409_vm8, %vm410_vm14  ;;  %v430_v15 = vand.u32 2147483648, %v1338_v40  ;;  %p1031_p3 = pnand %p1030_p1, %p1026_p2 }
  0x71   : > { %v363_v54 = vadd.f32 %v855_v25, %v362_v45  ;;  %v406_v62 = vsub.f32 1.0, %v405_v56  ;;  %v392_v2 = vmul.f32 %v859_v44, %v391_v59  ;;  %v764_v18 = vadd.f32 -1e-07, %v1377_v4 }
  0x72   : > { %v378_v58 = vadd.f32 %v857_v29, %v377_v50  ;;  %v863_v5 = vpop.eup %862  ;;  %v443_v19 = vand.u32 2147483647, %v1368_v63  ;;  %v1412_v30 = vadd.f32 1e-07, %v325_v41  ;;  %vm439_vm4 = vweird.f32 %v1368_v63 }
  0x73   : > { %v367_v61 = vsel %vm1348_vm9, %v855_v25, %v363_v54  ;;  %v407_v9 = vmul.f32 %v861_v48, %v406_v62  ;;  %v393_v12 = vadd.f32 %v859_v44, %v392_v2  ;;  %v420_v14 = vmul.f32 %v863_v5, %v1338_v40 }
  0x74   : > { %v372_v0 = vsel %vm1316_vm2, %v371_v23, %v367_v61  ;;  %v382_v1 = vsel %vm1359_vm11, %v857_v29, %v378_v58  ;;  %vm425_vm1 = vweird.f32 %v863_v5  ;;  %v445_v25 = vand.u32 2147483648, %v1368_v63 }
  0x75   : > { %v373_v6 = vmul.f32 %v372_v0, %v1301_v10  ;;  %v387_v7 = vsel %vm1323_vm3, %v386_v31, %v382_v1  ;;  %v408_v16 = vadd.f32 %v861_v48, %v407_v9  ;;  %v421_v22 = vsub.f32 1.0, %v420_v14  ;;  %vm1418_vm2 = vmor %vm424_vm12, %vm425_vm1 }
  0x76   : > { %v388_v11 = vmul.f32 %v387_v7, %v1303_v13  ;;  %v397_v13 = vsel %vm1384_vm15, %v859_v44, %v393_v12  ;;  %v865_v31 = vpop.eup %864  ;;  %vm1422_vm3 = vcmp.eq.f32.partialorder %v428_v60, 8.507059e+37  ;;  %vm1428_vm5 = vcmp.eq.f32.partialorder %v443_v19, 8.507059e+37 }
  0x77   : > { %866 = vlog2.f32 %v373_v6  ;;  %v402_v23 = vsel %vm1341_vm7, %v401_v46, %v397_v13  ;;  %v412_v24 = vsel %vm1393_vm0, %v861_v48, %v408_v16  ;;  %v422_v29 = vmul.f32 %v863_v5, %v421_v22 }
  0x78   : > { %868 = vlog2.f32 %v388_v11  ;;  %v403_v27 = vmul.f32 %v402_v23, %v1306_v17  ;;  %v417_v28 = vsel %vm1353_vm10, %v416_v57, %v412_v24  ;;  %v431_v17 = vor.u32 1.1754944e-38, %v430_v15 }
  0x79   : > { %870 = vrcp.f32 %v1374_v3  ;;  %v418_v32 = vmul.f32 %v417_v28, %v1314_v21  ;;  %v423_v36 = vadd.f32 %v863_v5, %v422_v29  ;;  %v435_v38 = vmul.f32 %v865_v31, %v1368_v63 }
  0x7a   : > { %872 = vlog2.f32 %v403_v27  ;;  %v446_v40 = vor.u32 1.1754944e-38, %v445_v25  ;;  %v458_v41 = vand.u32 2147483647, %v1374_v3  ;;  %v1433_v42 = vsub.f32 1.0, %v764_v18 }
  0x7b   : > { %874 = vlog2.f32 %v418_v32  ;;  %v427_v45 = vsel %vm1418_vm2, %v863_v5, %v423_v36  ;;  %v436_v46 = vsub.f32 1.0, %v435_v38  ;;  %vm440_vm6 = vweird.f32 %v865_v31 }
  0x7c   : > { %v432_v49 = vsel %vm1422_vm3, %v431_v17, %v427_v45  ;;  %v460_v50 = vand.u32 2147483648, %v1374_v3  ;;  %876 = vrcp.f32 %v1433_v42  ;;  %vm1447_vm7 = vmor %vm439_vm4, %vm440_vm6  ;;  %vm454_vm8 = vweird.f32 %v1374_v3  ;;  %v558_v17 = vld [vmem:[%s1280_s8 + $0x28] sm:$0xff] }
  0x7d   : > { %v867_v39 = vpop.eup %866  ;;  %v433_v52 = vmul.f32 %v432_v49, %v1330_v33  ;;  %v437_v53 = vmul.f32 %v865_v31, %v436_v46  ;;  %vm1452_vm10 = vcmp.eq.f32.partialorder %v458_v41, 8.507059e+37  ;;  %vm469_vm11 = vweird.f32 %v1433_v42  ;;  %v327_v41 = vld [vmem:[%s1295_s20] sm:$0xff] }
  0x7e   : > { %v869_v43 = vpop.eup %868  ;;  %v480_v44 = vmul.f32 0.6931472, %v867_v39  ;;  %v461_v0 = vor.u32 1.1754944e-38, %v460_v50  ;;  %v473_v10 = vand.u32 2147483647, %v1433_v42  ;;  %v475_v22 = vand.u32 2147483648, %v1433_v42 }
  0x7f   : > { %v871_v47 = vpop.eup %870  ;;  %v482_v48 = vmul.f32 0.6931472, %v869_v43  ;;  %878 = vlog2.f32 %v433_v52  ;;  %v438_v59 = vadd.f32 %v865_v31, %v437_v53  ;;  %v342_v35 = vadd.f32 1e-07, %v1377_v4  ;;  %v554_v52 = vld [vmem:[%s1280_s8 + $0x8] sm:$0xff] }
  0x80   : > { %v496_v51 = vmul.f32 %v1321_v26, %v480_v44  ;;  %v450_v54 = vmul.f32 %v871_v47, %v1374_v3  ;;  %vm455_vm9 = vweird.f32 %v871_v47  ;;  %v873_v58 = vpop.eup %872  ;;  %vm1491_vm15 = vcmp.eq.f32.partialorder %v473_v10, 8.507059e+37  ;;  %v328_v44 = vld [vmem:[%s1295_s20 + $0x8] sm:$0xff] }
  0x81   : > { %v497_v55 = vmul.f32 %v1321_v26, %v482_v48  ;;  %v875_v61 = vpop.eup %874  ;;  %v484_v63 = vmul.f32 0.6931472, %v873_v58  ;;  %v442_v5 = vsel %vm1447_vm7, %v865_v31, %v438_v59  ;;  %vm1467_vm12 = vmor %vm454_vm8, %vm455_vm9  ;;  %v553_v48 = vld [vmem:[%s1280_s8] sm:$0xff]  ;;  %v1086_v56 = vmov 0.0  }
  0x82   : > { %v505_v33 = vadd.f32 %v1312_v20, %v496_v51  ;;  %v451_v60 = vsub.f32 1.0, %v450_v54  ;;  %v486_v2 = vmul.f32 0.6931472, %v875_v61  ;;  %v877_v7 = vpop.eup %876  ;;  %v447_v11 = vsel %vm1428_vm5, %v446_v40, %v442_v5  ;;  %v329_v61 = vld [vmem:[%s1295_s20 + $0x10] sm:$0xff] }
  0x83   : > { %v506_v62 = vadd.f32 %v1312_v20, %v497_v55  ;;  %v498_v9 = vmul.f32 %v1321_v26, %v484_v63  ;;  %v448_v15 = vmul.f32 %v447_v11, %v1335_v37  ;;  %v465_v13 = vmul.f32 %v877_v7, %v1433_v42 }
  0x84   : > { %v513_v1 = vmul.f32 0.5, %v505_v33  ;;  %v452_v6 = vmul.f32 %v871_v47, %v451_v60  ;;  %v499_v14 = vmul.f32 %v1321_v26, %v486_v2  ;;  %vm470_vm13 = vweird.f32 %v877_v7  ;;  %v330_v2 = vld [vmem:[%s1295_s20 + $0x18] sm:$0xff] }
  0x85   : > { %v514_v8 = vmul.f32 0.5, %v506_v62  ;;  %v507_v18 = vadd.f32 %v1312_v20, %v498_v9  ;;  %v879_v3 = vpop.eup %878  ;;  %v466_v27 = vsub.f32 1.0, %v465_v13  ;;  %vm1487_vm14 = vmor %vm469_vm11, %vm470_vm13  ;;  %v556_v9 = vld [vmem:[%s1280_s8 + $0x18] sm:$0xff] }
  0x86   : > { %880 = vtanh.f32 %v513_v1  ;;  %v453_v16 = vadd.f32 %v871_v47, %v452_v6  ;;  %v508_v19 = vadd.f32 %v1312_v20, %v499_v14  ;;  %v488_v25 = vmul.f32 0.6931472, %v879_v3  ;;  %v555_v6 = vld [vmem:[%s1280_s8 + $0x10] sm:$0xff] }
  0x87   : > { %882 = vtanh.f32 %v514_v8  ;;  %v515_v24 = vmul.f32 0.5, %v507_v18  ;;  %v467_v32 = vmul.f32 %v877_v7, %v466_v27 }
  0x88   : > { %884 = vlog2.f32 %v448_v15  ;;  %v457_v23 = vsel %vm1467_vm12, %v871_v47, %v453_v16  ;;  %v516_v28 = vmul.f32 0.5, %v508_v19  ;;  %v500_v31 = vmul.f32 %v1321_v26, %v488_v25 }
  0x89   : > { %v462_v37 = vsel %vm1452_vm10, %v461_v0, %v457_v23  ;;  %886 = vtanh.f32 %v515_v24  ;;  %v468_v40 = vadd.f32 %v877_v7, %v467_v32  ;;  %v557_v24 = vld [vmem:[%s1280_s8 + $0x20] sm:$0xff]  ;;  %v332_v32 = vld [vmem:[%s1295_s20 + $0x28] sm:$0xff] }
  0x8a   : > { %v463_v29 = vmul.f32 %v462_v37, %v1412_v30  ;;  %888 = vtanh.f32 %v516_v28  ;;  %v476_v30 = vor.u32 1.1754944e-38, %v475_v22  ;;  %v509_v39 = vadd.f32 %v1312_v20, %v500_v31  ;;  %v331_v22 = vld [vmem:[%s1295_s20 + $0x20] sm:$0xff] }
  0x8b   : > { %v472_v47 = vsel %vm1487_vm14, %v877_v7, %v468_v40 }
  0x8c   : > { %v881_v34 = vpop.eup %880  ;;  %890 = vlog2.f32 %v463_v29  ;;  %v517_v45 = vmul.f32 0.5, %v509_v39  ;;  %v477_v50 = vsel %vm1491_vm15, %v476_v30, %v472_v47  ;;  %v333_v39 = vld [vmem:[%s1295_s20 + $0x30] sm:$0xff] }
  0x8d   : > { %v883_v38 = vpop.eup %882  ;;  %v529_v21 = vadd.f32 1.0, %v881_v34  ;;  %v478_v54 = vmul.f32 %v477_v50, %v342_v35 }
  0x8e   : > { %v885_v4 = vpop.eup %884  ;;  %v530_v42 = vadd.f32 1.0, %v883_v38  ;;  %892 = vtanh.f32 %v517_v45 }
  0x8f   : > { %v537_v43 = vmul.f32 0.5, %v529_v21  ;;  %v490_v46 = vmul.f32 0.6931472, %v885_v4  ;;  %v887_v51 = vpop.eup %886  ;;  %894 = vlog2.f32 %v478_v54 }
  0x90   : > { %v538_v49 = vmul.f32 0.5, %v530_v42  ;;  %v889_v55 = vpop.eup %888  ;;  %v531_v58 = vadd.f32 1.0, %v887_v51 }
  0x91   : > { %vm545_vm0 = vcmp.lt.f32.partialorder %v327_v41, %v537_v43  ;;  %v501_v53 = vmul.f32 %v1321_v26, %v490_v46  ;;  %v532_v62 = vadd.f32 1.0, %v889_v55  ;;  %v560_v46 = vld [vmem:[%s1280_s8 + $0x38] sm:$0xff] }
  0x92   : > { %v765_v57 = vsel %vm545_vm0, 1.0, %v1086_v56  ;;  %vm546_vm1 = vcmp.lt.f32.partialorder %v328_v44, %v538_v49  ;;  %v891_v33 = vpop.eup %890  ;;  %v539_v1 = vmul.f32 0.5, %v531_v58  ;;  %v334_v44 = vld [vmem:[%s1295_s20 + $0x38] sm:$0xff] }
  0x93   : > { %v577_v59 = vmul.f32 %v765_v57, %v553_v48  ;;  %v766_v60 = vsel %vm546_vm1, 1.0, %v1086_v56  ;;  %v510_v63 = vadd.f32 %v1312_v20, %v501_v53  ;;  %v492_v5 = vmul.f32 0.6931472, %v891_v33 }
  0x94   : > { %v578_v0 = vmul.f32 %v766_v60, %v554_v52  ;;  %v540_v7 = vmul.f32 0.5, %v532_v62  ;;  %vm547_vm2 = vcmp.lt.f32.partialorder %v329_v61, %v539_v1  ;;  %v893_v12 = vpop.eup %892 }
  0x95   : > { %585 = vst [vmem:[%s1511_s30] sm:$0xff] %v577_v59  ;;  %v518_v8 = vmul.f32 0.5, %v510_v63  ;;  %v502_v11 = vmul.f32 %v1321_v26, %v492_v5  ;;  %v767_v10 = vsel %vm547_vm2, 1.0, %v1086_v56  ;;  %v533_v16 = vadd.f32 1.0, %v893_v12  ;;  %v895_v3 = vpop.eup %894 }
  0x96   : > { %586 = vst [vmem:[%s1511_s30 + $0x8] sm:$0xff] %v578_v0  ;;  %vm548_vm3 = vcmp.lt.f32.partialorder %v330_v2, %v540_v7  ;;  %v579_v14 = vmul.f32 %v767_v10, %v555_v6  ;;  %v494_v25 = vmul.f32 0.6931472, %v895_v3 }
  0x97   : > { %896 = vtanh.f32 %v518_v8  ;;  %v768_v15 = vsel %vm548_vm3, 1.0, %v1086_v56  ;;  %v511_v18 = vadd.f32 %v1312_v20, %v502_v11  ;;  %v541_v19 = vmul.f32 0.5, %v533_v16 }
  0x98   : > { %v580_v13 = vmul.f32 %v768_v15, %v556_v9  ;;  %587 = vst [vmem:[%s1511_s30 + $0x10] sm:$0xff] %v579_v14  ;;  %v503_v28 = vmul.f32 %v1321_v26, %v494_v25 }
  0x99   : > { %v519_v23 = vmul.f32 0.5, %v511_v18  ;;  %vm549_vm4 = vcmp.lt.f32.partialorder %v331_v22, %v541_v19 }
  0x9a   : > { %588 = vst [vmem:[%s1511_s30 + $0x18] sm:$0xff] %v580_v13  ;;  %v769_v27 = vsel %vm549_vm4, 1.0, %v1086_v56  ;;  %v512_v34 = vadd.f32 %v1312_v20, %v503_v28  ;;  %v559_v20 = vld [vmem:[%s1280_s8 + $0x30] sm:$0xff] }
  0x9b   : > { %898 = vtanh.f32 %v519_v23  ;;  %v581_v29 = vmul.f32 %v769_v27, %v557_v24 }
  0x9c   : > { %v520_v36 = vmul.f32 0.5, %v512_v34 }
  0x9d   : > { %v897_v37 = vpop.eup %896  ;;  %589 = vst [vmem:[%s1511_s30 + $0x20] sm:$0xff] %v581_v29 }
  0x9e   : > { %v534_v31 = vadd.f32 1.0, %v897_v37  ;;  %900 = vtanh.f32 %v520_v36 }
  0xa0   : > { %v542_v35 = vmul.f32 0.5, %v534_v31 }
  0xa1   : > { %v899_v30 = vpop.eup %898 }
  0xa2   : > { %vm550_vm5 = vcmp.lt.f32.partialorder %v332_v32, %v542_v35  ;;  %v535_v21 = vadd.f32 1.0, %v899_v30 }
  0xa3   : > { %v770_v38 = vsel %vm550_vm5, 1.0, %v1086_v56 }
  0xa4   : > { %v582_v26 = vmul.f32 %v770_v38, %v558_v17  ;;  %v543_v40 = vmul.f32 0.5, %v535_v21  ;;  %v901_v41 = vpop.eup %900 }
  0xa5   : > { %v536_v43 = vadd.f32 1.0, %v901_v41 }
  0xa6   : > { %590 = vst [vmem:[%s1511_s30 + $0x28] sm:$0xff] %v582_v26  ;;  %vm551_vm6 = vcmp.lt.f32.partialorder %v333_v39, %v543_v40 }
  0xa7   : > { %v771_v4 = vsel %vm551_vm6, 1.0, %v1086_v56  ;;  %v544_v45 = vmul.f32 0.5, %v536_v43 }
  0xa8   : > { %v583_v42 = vmul.f32 %v771_v4, %v559_v20 }
  0xa9   : > { %vm552_vm7 = vcmp.lt.f32.partialorder %v334_v44, %v544_v45 }
  0xaa   : > { %591 = vst [vmem:[%s1511_s30 + $0x30] sm:$0xff] %v583_v42  ;;  %v772_v47 = vsel %vm552_vm7, 1.0, %v1086_v56 }
  0xab   : > { %v584_v48 = vmul.f32 %v772_v47, %v560_v46 }
  0xad   : > { %592 = vst [vmem:[%s1511_s30 + $0x38] sm:$0xff] %v584_v48 }
  0xae   : > { %1034 = shalt.err (!%p1031_p3)
}
  0xaf   : > { %s1087_s2 = smov 128   ;;  %s1088_s8 = smov 8  }
  0xb0   : > { %792 = dma.vmem_to_hbm [thread:$0]  (%p1205_p9), %s607_s9, 1024, %s609_s19, %s594_s28, %s1087_s2, %s1087_s2, %s1088_s8  }
  0xb1 PF: > { %p815_p4 = scmp.ge.s32.totalorder %s1081_s18, 2  ;;  %s623_s27 = sand.u32 1, %s1069_s15  }
  0xb2   : > { %s624_s11 = scalar_lea.sflag [#allocation4], %s623_s27 }
  0xb3   : > { %p809_p8 = pnand %p815_p4, %p1209_p10 }
  0xb5   : > { %p810_p11 = pneg %p809_p8 }
  0xb7   : > { %1064 = dma.done.wait (%p810_p11), %s624_s11, 1024  }
  0xb8   : > { %1066 = vsyncadd (%p810_p11), %s624_s11, 4294966272  ;;  %s1635_s18 = sld [smem:[#allocation15_spill]]  ;;  %s1637_s15 = smov %s1073_s16 }
  0xb9   : > { %s1636_s20 = sld [smem:[#allocation16_spill]]  ;;  %s1638_s16 = smov %s1077_s17 }
  0xbe   : > { %p21_p0 = scmp.ge.s32.totalorder %s1635_s18, 6  }
  0xbf   : > { %s1639_s17 = smov %s1636_s20 }
  0xc0   :  { %23 = sbr.rel (!%p21_p0) target bundleno = 11 (0xb), region = 110 }
  0xc5   :  { %630 = vsyncpa [#allocation3], 1 }
  0xc6   :  { %632 = vsyncpa [#allocation3 + $0x1], 1 }
  0xc7   :  { %633 = vsyncpa [#allocation8], 1 }
  0xc8   :  { %635 = vsyncpa [#allocation8 + $0x1], 1 }
  0xc9   :  { %636 = vsyncpa [#allocation4], 1 }
  0xca   :  { %638 = vsyncpa [#allocation4 + $0x1], 1 }
  0xcb   :  { %639 = vsyncpa [#allocation5], 1 }
  0xcc   :  { %641 = vsyncpa [#allocation5 + $0x1], 1 }

</bundles_post_ra>
